<compile_context>
chip_gen: v6e
topology: v6e:2x2x1
jax: 0.10.0
libtpu: 0.0.40
codegen_flags: <defaults>
</compile_context>

<pallas_src>
import functools

import jax
import jax.numpy as jnp
from jax.experimental import pallas as pl
from jax.experimental.pallas import tpu as pltpu


def _round_up(x, m):
    return ((x + m - 1) // m) * m


# ----------------------------- Pallas kernel -------------------------------

def irt_kernel(theta_ref, alpha_ref, beta_ref, out_ref):
    # theta_ref, alpha_ref: [Dp, TB]  (features on sublanes, batch on lanes)
    # beta_ref:             [1,  TB]  (per-item bias, lane-dense)
    # out_ref:              [1,  TB]  (lane-dense output row)
    prod = alpha_ref[...] * theta_ref[...]              # VPU elementwise, lane-dense
    logit = jnp.sum(prod, axis=0, keepdims=True)        # sublane (XLU) reduction -> [1, TB]
    logit = logit + beta_ref[...]
    out_ref[...] = jax.nn.sigmoid(logit)                # EUP transcendental


@functools.partial(jax.jit, static_argnames=("max_tile_b",))
def irt_forward(theta_emb, alpha_emb, beta_emb, student_ids, question_ids,
                *, max_tile_b=2048):
    """IRT forward. Gather + layout shuffle is glue; the hot path is the kernel."""
    dtype = jnp.float32

    # --- glue: embedding gathers (equivalent of nn.Embedding lookups) ---
    theta = jnp.take(theta_emb, student_ids, axis=0).astype(dtype)   # [B, D]
    alpha = jnp.take(alpha_emb, question_ids, axis=0).astype(dtype)  # [B, D]
    beta = jnp.take(beta_emb, question_ids, axis=0).astype(dtype)    # [B, 1]

    B, D = theta.shape

    # --- glue: lane-dense slabs (features x batch); beta stays a single row ---
    Dp = _round_up(D, 8)                           # sublane-aligned feature rows
    tile_b = min(_round_up(B, 128), max_tile_b)    # large, lane-aligned tile
    B_pad = _round_up(B, tile_b)

    pad_slab = ((0, Dp - D), (0, B_pad - B))
    theta_slab = jnp.pad(theta.T, pad_slab)        # [Dp, B_pad]; zero rows add 0
    alpha_slab = jnp.pad(alpha.T, pad_slab)        # [Dp, B_pad]
    beta_row = jnp.pad(beta.T, ((0, 0), (0, B_pad - B)))  # [1, B_pad]

    grid = (B_pad // tile_b,)
    out = pl.pallas_call(
        irt_kernel,
        out_shape=jax.ShapeDtypeStruct((1, B_pad), jnp.float32),
        grid_spec=pltpu.PrefetchScalarGridSpec(
            num_scalar_prefetch=0,
            grid=grid,
            in_specs=[
                pl.BlockSpec((Dp, tile_b), lambda i: (0, i)),  # theta slab tile
                pl.BlockSpec((Dp, tile_b), lambda i: (0, i)),  # alpha slab tile
                pl.BlockSpec((1, tile_b), lambda i: (0, i)),   # beta row tile
            ],
            out_specs=pl.BlockSpec((1, tile_b), lambda i: (0, i)),
        ),
        compiler_params=pltpu.CompilerParams(
            dimension_semantics=("parallel",)),     # shards across v7x's 2 TCs
    )(theta_slab, alpha_slab, beta_row)

    # Drop lane padding and present the PyTorch [B, 1] shape.
    return out[0, :B].reshape(B, 1)


# ----------------------- deterministic parameter init ----------------------

def xavier_normal(key, shape):
    # nn.init.xavier_normal_ for a 2-D weight [fan_out, fan_in]:
    # std = sqrt(2 / (fan_in + fan_out))
    fan_out, fan_in = shape
    std = (2.0 / (fan_in + fan_out)) ** 0.5
    return std * jax.random.normal(key, shape, dtype=jnp.float32)


def reference_forward(theta_emb, alpha_emb, beta_emb, student_ids, question_ids):
    theta = theta_emb[student_ids]
    alpha = alpha_emb[question_ids]
    beta = beta_emb[question_ids]
    return jax.nn.sigmoid(jnp.sum(alpha * theta, axis=1, keepdims=True) + beta)


# ---------------------------------- main ------------------------------------

if __name__ == "__main__":
    num_students = 32
    num_questions = 64
    num_dim = 16
    batch = 8

    key = jax.random.PRNGKey(0)
    k_theta, k_alpha, k_beta, k_s, k_q = jax.random.split(key, 5)

    theta_emb = xavier_normal(k_theta, (num_students, num_dim))
    alpha_emb = xavier_normal(k_alpha, (num_questions, num_dim))
    beta_emb = xavier_normal(k_beta, (num_questions, 1))

    student_ids = jax.random.randint(k_s, (batch,), 0, num_students)
    question_ids = jax.random.randint(k_q, (batch,), 0, num_questions)

    pred = irt_forward(theta_emb, alpha_emb, beta_emb, student_ids, question_ids)
    pred = jax.block_until_ready(pred)

    ref = reference_forward(theta_emb, alpha_emb, beta_emb, student_ids, question_ids)
    assert pred.shape == (batch, 1), pred.shape
    assert jnp.allclose(pred, ref, atol=1e-6, rtol=1e-6), (pred, ref)

    print("KERNEL_OK")
</pallas_src>

<mosaic_0001>
module attributes {stable_mosaic.version = 11 : i64} {
  func.func @irt_kernel(%arg0: i32, %arg1: memref<16x128xf32, #tpu.memory_space<vmem>>, %arg2: memref<16x128xf32, #tpu.memory_space<vmem>>, %arg3: memref<1x128xf32, #tpu.memory_space<vmem>>, %arg4: memref<1x128xf32, #tpu.memory_space<vmem>>) attributes {dimension_semantics = [#tpu.dimension_semantics<parallel>], iteration_bounds = array<i64: 1>, scalar_prefetch = 0 : i64, scratch_operands = 0 : i64, tpu.core_type = #tpu.core_type<tc>, window_params = [{transform_indices = @transform_0, window_bounds = array<i64: 16, 128>}, {transform_indices = @transform_1, window_bounds = array<i64: 16, 128>}, {transform_indices = @transform_2, window_bounds = array<i64: 1, 128>}, {transform_indices = @transform_3, window_bounds = array<i64: 1, 128>}]} {
    %c0 = arith.constant 0 : index
    %c0_0 = arith.constant 0 : index
    %0 = vector.load %arg2[%c0, %c0_0] : memref<16x128xf32, #tpu.memory_space<vmem>>, vector<16x128xf32>
    %c0_1 = arith.constant 0 : index
    %c0_2 = arith.constant 0 : index
    %1 = vector.load %arg1[%c0_1, %c0_2] : memref<16x128xf32, #tpu.memory_space<vmem>>, vector<16x128xf32>
    %2 = arith.mulf %0, %1 : vector<16x128xf32>
    %cst = arith.constant dense<0.000000e+00> : vector<128xf32>
    %3 = vector.multi_reduction <add>, %2, %cst [0] : vector<16x128xf32> to vector<128xf32>
    %4 = vector.shape_cast %3 : vector<128xf32> to vector<1x128xf32>
    %c0_3 = arith.constant 0 : index
    %c0_4 = arith.constant 0 : index
    %5 = vector.load %arg3[%c0_3, %c0_4] : memref<1x128xf32, #tpu.memory_space<vmem>>, vector<1x128xf32>
    %6 = arith.addf %4, %5 : vector<1x128xf32>
    %7 = arith.negf %6 : vector<1x128xf32>
    %8 = math.exp %7 : vector<1x128xf32>
    %cst_5 = arith.constant 1.000000e+00 : f32
    %9 = vector.broadcast %cst_5 : f32 to vector<1x128xf32>
    %10 = arith.addf %9, %8 : vector<1x128xf32>
    %11 = arith.divf %9, %10 : vector<1x128xf32>
    %c0_6 = arith.constant 0 : index
    %c0_7 = arith.constant 0 : index
    %12 = vector.load %arg4[%c0_6, %c0_7] : memref<1x128xf32, #tpu.memory_space<vmem>>, vector<1x128xf32>
    tpu.vector_store %arg4[%c0_6, %c0_7], %11 {strides = array<i32>} : memref<1x128xf32, #tpu.memory_space<vmem>>, vector<1x128xf32>,
    return
  }
  func.func @transform_0(%arg0: i32) -> (i32, i32) {
    %c0_i32 = arith.constant 0 : i32
    %c0_i32_0 = arith.constant 0 : i32
    return %c0_i32, %arg0 : i32, i32
  }
  func.func @transform_1(%arg0: i32) -> (i32, i32) {
    %c0_i32 = arith.constant 0 : i32
    %c0_i32_0 = arith.constant 0 : i32
    return %c0_i32, %arg0 : i32, i32
  }
  func.func @transform_2(%arg0: i32) -> (i32, i32) {
    %c0_i32 = arith.constant 0 : i32
    %c0_i32_0 = arith.constant 0 : i32
    return %c0_i32, %arg0 : i32, i32
  }
  func.func @transform_3(%arg0: i32) -> (i32, i32) {
    %c0_i32 = arith.constant 0 : i32
    %c0_i32_0 = arith.constant 0 : i32
    return %c0_i32, %arg0 : i32, i32
  }
}

</mosaic_0001>

<bundles_post_ra>
// kernel: irt_forward.1
= control target key start
LH: loop header
LB: loop body
LE: loop exit
PB: predicated region body
PF: predicated region fallthrough
CT: control target
= control target key end

     0   :  { %s83_s0 = inlined_call_operand.vmem [shape: f32[16,128], index: 0, kind: input, shape index: {}]   ;;  %s84_s1 = inlined_call_operand.vmem [shape: f32[16,128], index: 1, kind: input, shape index: {}]   ;;  %s85_s2 = inlined_call_operand.vmem [shape: f32[1,128], index: 2, kind: input, shape index: {}]   ;;  %s86_s3 = inlined_call_operand.vmem [shape: f32[1,128], index: 3, kind: output, shape index: {}]  }
   0x1   :  { %v14_v0 = vld [vmem:[%s84_s1] sm:$0xff]  ;;  %v15_v1 = vld [vmem:[%s84_s1 + $0x8] sm:$0xff] }
   0x2   :  { %v16_v2 = vld [vmem:[%s83_s0] sm:$0xff]  ;;  %v17_v3 = vld [vmem:[%s83_s0 + $0x8] sm:$0xff] }
   0x3   :  { %v18_v4 = vmul.f32 %v16_v2, %v14_v0  ;;  %v19_v5 = vmul.f32 %v17_v3, %v15_v1  ;;  %v27_v12 = vld [vmem:[%s85_s2] sm:$0x1] }
   0x5   :  { %v20_v6 = vadd.f32 %v19_v5, %v18_v4 }
   0x7   :  { %v21_v7 = vrot.slane %v20_v6, 4 }
   0x9   :  { %v22_v8 = vadd.f32 %v21_v7, %v20_v6 }
   0xb   :  { %v23_v9 = vrot.slane %v22_v8, 2 }
   0xd   :  { %v24_v10 = vadd.f32 %v23_v9, %v22_v8 }
   0xf   :  { %v25_v11 = vrot.slane %v24_v10, 1 }
  0x11   :  { %v26_v13 = vadd.f32 %v25_v11, %v24_v10 }
  0x13   :  { %v28_v14 = vadd.f32 %v27_v12, %v26_v13 }
  0x15   :  { %v40_v15 = vmul.f32 -1.442695, %v28_v14 }
  0x17   :  { %41 = vpow2.f32 %v40_v15 }
  0x24   :  { %v42_v16 = vpop.eup %41 }
  0x25   :  { %v32_v17 = vadd.f32 1.0, %v42_v16 }
  0x27   :  { %43 = vrcp.f32 %v32_v17 }
  0x34   :  { %v44_v18 = vpop.eup %43 }
  0x35   :  { %35 = vst [vmem:[%s86_s3] sm:$0x1] %v44_v18 }

</bundles_post_ra>
